<compile_context>
chip_gen: v5e
topology: v5e:2x2
jax: 0.10.0
libtpu: 0.0.40
codegen_flags: <defaults>
</compile_context>

<pallas_src>
import math

import jax
import jax.numpy as jnp
from jax.experimental import pallas as pl
from jax.experimental.pallas import tpu as pltpu


def _expr_cls_kernel(x_ref, wf_ref, bf_ref, out_ref):
    # (tile_b,128) f32 -> bf16, MXU matmul vs (128,E_pad) bf16 weights,
    # f32 accumulation, bias add, numerically-stable row softmax.
    x = x_ref[...].astype(jnp.bfloat16)
    logits = jnp.dot(x, wf_ref[...], preferred_element_type=jnp.float32)
    logits = logits + bf_ref[...]                 # pad columns carry -1e30

    m = jnp.max(logits, axis=-1, keepdims=True)
    e = jnp.exp(logits - m)                       # pad columns -> exactly 0
    s = jnp.sum(e, axis=-1, keepdims=True)
    r = pl.reciprocal(s, approx=True)             # EUP vrcp (VALU-free)
    r = r * (2.0 - s * r)                         # one Newton step -> ~f32 exact
    probs = e * r

    # Store only the real E columns (masked vst) -> unpadded output in HBM.
    out_ref[...] = probs[:, : out_ref.shape[-1]]


def expression_classification_forward(x, params, tile_b=None):
    """x: (B, 128) float32 -> (B, E) float32 softmax probabilities."""
    w1, b1, w2, b2, w3, b3 = params
    B, D = x.shape
    assert D == 128, "expression_classification expects 128-dim features"
    E = w3.shape[1]
    E_pad = ((E + 127) // 128) * 128

    # Fold the three affine layers into one (exact: module has no activations).
    wf = (w1 @ w2) @ w3                                   # (128, E) f32
    bf = ((b1 @ w2) + b2) @ w3 + b3                       # (1, E)   f32
    if E_pad != E:
        # Zero weight columns + -1e30 bias => padded logits contribute exp()=0.
        wf = jnp.pad(wf, ((0, 0), (0, E_pad - E)))
        bf = jnp.pad(bf, ((0, 0), (0, E_pad - E)), constant_values=-1e30)
    wf = wf.astype(jnp.bfloat16)                          # bf16 MXU operand
    bf = bf.astype(jnp.float32)

    # --- Per-generation tiling ---------------------------------------------
    kind = jax.devices()[0].device_kind.lower()
    is_v7 = ("v7" in kind) or ("7x" in kind)
    vmem_budget = (24 if is_v7 else 48) * 1024 * 1024     # working-set budget
    row_cap = 2048 if is_v7 else 4096                     # max rows per tile
    vmem_limit = (32 if is_v7 else 64) * 1024 * 1024

    if tile_b is None:
        # Per-row bytes: double-buffered x + out tiles plus in-kernel temps.
        per_row = 2 * 128 * 4 + 2 * E * 4 + 128 * 2 + 3 * E_pad * 4
        tile_b = max(8, min(row_cap, (vmem_budget // per_row) // 8 * 8))
    tile_b = min(tile_b, ((B + 7) // 8) * 8)              # no bigger than batch
    n_tiles = -(-B // tile_b)                             # ceil-div (no x pad)

    # v7x: guarantee >= 2 grid steps so CORE_PARALLEL can feed both cores.
    if is_v7 and n_tiles == 1 and tile_b >= 16:
        tile_b = ((tile_b // 2) + 7) // 8 * 8
        n_tiles = -(-B // tile_b)

    def call(tuned):
        if tuned:
            resident = dict(pipeline_mode=pl.Buffered(1))  # weights: 1 buffer
            sem = (pltpu.CORE_PARALLEL if (is_v7 and n_tiles >= 2)
                   else pltpu.PARALLEL,)
        else:
            resident = {}
            sem = (pltpu.PARALLEL,)
        return pl.pallas_call(
            _expr_cls_kernel,
            out_shape=jax.ShapeDtypeStruct((B, E), jnp.float32),
            grid=(n_tiles,),
            in_specs=[
                pl.BlockSpec((tile_b, 128), lambda i: (i, 0)),          # x
                pl.BlockSpec((128, E_pad), lambda i: (0, 0), **resident),  # Wf
                pl.BlockSpec((1, E_pad), lambda i: (0, 0), **resident),    # bf
            ],
            out_specs=pl.BlockSpec((tile_b, E), lambda i: (i, 0)),
            compiler_params=pltpu.CompilerParams(
                dimension_semantics=sem,
                vmem_limit_bytes=vmem_limit,
            ),
        )(x, wf, bf)

    try:
        return call(tuned=True)
    except Exception:
        # Fallback if this jax build rejects pl.Buffered(1) / CORE_PARALLEL:
        # identical math, default double-buffering, plain "parallel" axis.
        return call(tuned=False)


def _xavier_uniform(key, fan_in, fan_out):
    # Matches nn.init.xavier_uniform_ (gain=1): U(-a, a), a = sqrt(6/(fan_in+fan_out))
    bound = math.sqrt(6.0 / (fan_in + fan_out))
    return jax.random.uniform(key, (fan_in, fan_out), jnp.float32,
                              minval=-bound, maxval=bound)


def init_params(key, no_of_expressions):
    k1, k2, k3 = jax.random.split(key, 3)
    return (
        _xavier_uniform(k1, 128, 128), jnp.zeros((1, 128), jnp.float32),
        _xavier_uniform(k2, 128, 128), jnp.zeros((1, 128), jnp.float32),
        _xavier_uniform(k3, 128, no_of_expressions),
        jnp.zeros((1, no_of_expressions), jnp.float32),
    )


def _reference(x, params):
    # Plain-JAX reference: 3 linears + softmax, same math as the PyTorch module.
    w1, b1, w2, b2, w3, b3 = params
    h = x @ w1 + b1
    h = h @ w2 + b2
    logits = h @ w3 + b3
    return jax.nn.softmax(logits, axis=1)


if __name__ == "__main__":
    no_of_expressions = 7
    key = jax.random.PRNGKey(0)
    k_x, k_x2, k_p = jax.random.split(key, 3)
    params = init_params(k_p, no_of_expressions)

    # Main check: batch that is a multiple of the 8-row sublane tile.
    x = jax.random.normal(k_x, (8, 128), jnp.float32)
    out = jax.block_until_ready(expression_classification_forward(x, params))
    ref = _reference(x, params)
    assert out.shape == (8, no_of_expressions)
    # Tolerance covers the bf16 MXU matmul and the offline fp32 weight fold
    # (exact in math, fp-reassociated).
    assert jnp.allclose(out, ref, atol=1e-2, rtol=1e-2), \
        float(jnp.max(jnp.abs(out - ref)))
    # Newton-refined reciprocal -> rows sum to 1 well within 1e-3.
    assert jnp.allclose(jnp.sum(out, axis=1), 1.0, atol=1e-3)

    # Ragged batch (B=5): exercises the partial trailing block (no x padding).
    x2 = jax.random.normal(k_x2, (5, 128), jnp.float32)
    out2 = jax.block_until_ready(expression_classification_forward(x2, params))
    ref2 = _reference(x2, params)
    assert out2.shape == (5, no_of_expressions)
    assert jnp.allclose(out2, ref2, atol=1e-2, rtol=1e-2)
    assert jnp.allclose(jnp.sum(out2, axis=1), 1.0, atol=1e-3)

    print("KERNEL_OK")
</pallas_src>

<mosaic_0001>
module attributes {stable_mosaic.version = 11 : i64} {
  func.func @_expr_cls_kernel(%arg0: i32, %arg1: memref<8x128xf32, #tpu.memory_space<vmem>>, %arg2: memref<128x128xbf16, #tpu.memory_space<vmem>>, %arg3: memref<1x128xf32, #tpu.memory_space<vmem>>, %arg4: memref<8x7xf32, #tpu.memory_space<vmem>>) attributes {dimension_semantics = [#tpu.dimension_semantics<parallel>], iteration_bounds = array<i64: 1>, scalar_prefetch = 0 : i64, scratch_operands = 0 : i64, tpu.core_type = #tpu.core_type<tc>, window_params = [{transform_indices = @transform_0, window_bounds = array<i64: 8, 128>}, {pipeline_mode = #tpu.pipeline_mode<synchronous>, transform_indices = @transform_1, window_bounds = array<i64: 128, 128>}, {pipeline_mode = #tpu.pipeline_mode<synchronous>, transform_indices = @transform_2, window_bounds = array<i64: 1, 128>}, {transform_indices = @transform_3, window_bounds = array<i64: 8, 7>}]} {
    %c0 = arith.constant 0 : index
    %c0_0 = arith.constant 0 : index
    %0 = vector.load %arg1[%c0, %c0_0] : memref<8x128xf32, #tpu.memory_space<vmem>>, vector<8x128xf32>
    %1 = arith.truncf %0 : vector<8x128xf32> to vector<8x128xbf16>
    %c0_1 = arith.constant 0 : index
    %c0_2 = arith.constant 0 : index
    %2 = vector.load %arg2[%c0_1, %c0_2] : memref<128x128xbf16, #tpu.memory_space<vmem>>, vector<128x128xbf16>
    %cst = arith.constant dense<0.000000e+00> : vector<8x128xf32>
    %3 = tpu.matmul %1, %2, %cst {dimension_numbers = #tpu.dot_dimension_numbers<[1], [0], [0], [1], [0, 0, 1, 1], [], []>} : vector<8x128xbf16>, vector<128x128xbf16>, vector<8x128xf32> -> vector<8x128xf32>
    %c0_3 = arith.constant 0 : index
    %c0_4 = arith.constant 0 : index
    %4 = vector.load %arg3[%c0_3, %c0_4] : memref<1x128xf32, #tpu.memory_space<vmem>>, vector<1x128xf32>
    %5 = vector.broadcast %4 : vector<1x128xf32> to vector<8x128xf32>
    %6 = arith.addf %3, %5 : vector<8x128xf32>
    %cst_5 = arith.constant dense<0xFF800000> : vector<8xf32>
    %7 = vector.multi_reduction <maximumf>, %6, %cst_5 [1] : vector<8x128xf32> to vector<8xf32>
    %8 = vector.shape_cast %7 : vector<8xf32> to vector<8x1xf32>
    %9 = vector.broadcast %8 : vector<8x1xf32> to vector<8x128xf32>
    %10 = arith.subf %6, %9 : vector<8x128xf32>
    %11 = math.exp %10 : vector<8x128xf32>
    %cst_6 = arith.constant dense<0.000000e+00> : vector<8xf32>
    %12 = vector.multi_reduction <add>, %11, %cst_6 [1] : vector<8x128xf32> to vector<8xf32>
    %13 = vector.shape_cast %12 : vector<8xf32> to vector<8x1xf32>
    %14 = tpu.reciprocal %13 {approx = true} : vector<8x1xf32> -> vector<8x1xf32>
    %15 = arith.mulf %13, %14 : vector<8x1xf32>
    %cst_7 = arith.constant 2.000000e+00 : f32
    %16 = vector.broadcast %cst_7 : f32 to vector<8x1xf32>
    %17 = arith.subf %16, %15 : vector<8x1xf32>
    %18 = arith.mulf %14, %17 : vector<8x1xf32>
    %19 = vector.broadcast %18 : vector<8x1xf32> to vector<8x128xf32>
    %20 = arith.mulf %11, %19 : vector<8x128xf32>
    %21 = vector.extract_strided_slice %20 {offsets = [0, 0], sizes = [8, 7], strides = [1, 1]} : vector<8x128xf32> to vector<8x7xf32>
    %c0_8 = arith.constant 0 : index
    %c0_9 = arith.constant 0 : index
    %22 = vector.load %arg4[%c0_8, %c0_9] : memref<8x7xf32, #tpu.memory_space<vmem>>, vector<8x7xf32>
    tpu.vector_store %arg4[%c0_8, %c0_9], %21 {strides = array<i32>} : memref<8x7xf32, #tpu.memory_space<vmem>>, vector<8x7xf32>,
    return
  }
  func.func @transform_0(%arg0: i32) -> (i32, i32) {
    %c0_i32 = arith.constant 0 : i32
    %c0_i32_0 = arith.constant 0 : i32
    return %arg0, %c0_i32 : i32, i32
  }
  func.func @transform_1(%arg0: i32) -> (i32, i32) {
    %c0_i32 = arith.constant 0 : i32
    %c0_i32_0 = arith.constant 0 : i32
    %c0_i32_1 = arith.constant 0 : i32
    return %c0_i32, %c0_i32_0 : i32, i32
  }
  func.func @transform_2(%arg0: i32) -> (i32, i32) {
    %c0_i32 = arith.constant 0 : i32
    %c0_i32_0 = arith.constant 0 : i32
    %c0_i32_1 = arith.constant 0 : i32
    return %c0_i32, %c0_i32_0 : i32, i32
  }
  func.func @transform_3(%arg0: i32) -> (i32, i32) {
    %c0_i32 = arith.constant 0 : i32
    %c0_i32_0 = arith.constant 0 : i32
    return %arg0, %c0_i32 : i32, i32
  }
}

module attributes {stable_mosaic.version = 11 : i64} {
  func.func @_expr_cls_kernel(%arg0: i32, %arg1: memref<8x128xf32, #tpu.memory_space<vmem>>, %arg2: memref<128x128xbf16, #tpu.memory_space<vmem>>, %arg3: memref<1x128xf32, #tpu.memory_space<vmem>>, %arg4: memref<8x7xf32, #tpu.memory_space<vmem>>) attributes {dimension_semantics = [#tpu.dimension_semantics<parallel>], iteration_bounds = array<i64: 1>, scalar_prefetch = 0 : i64, scratch_operands = 0 : i64, tpu.core_type = #tpu.core_type<tc>, window_params = [{transform_indices = @transform_0, window_bounds = array<i64: 8, 128>}, {pipeline_mode = #tpu.pipeline_mode<synchronous>, transform_indices = @transform_1, window_bounds = array<i64: 128, 128>}, {pipeline_mode = #tpu.pipeline_mode<synchronous>, transform_indices = @transform_2, window_bounds = array<i64: 1, 128>}, {transform_indices = @transform_3, window_bounds = array<i64: 8, 7>}]} {
    %c0 = arith.constant 0 : index
    %c0_0 = arith.constant 0 : index
    %0 = vector.load %arg1[%c0, %c0_0] : memref<8x128xf32, #tpu.memory_space<vmem>>, vector<8x128xf32>
    %1 = arith.truncf %0 : vector<8x128xf32> to vector<8x128xbf16>
    %c0_1 = arith.constant 0 : index
    %c0_2 = arith.constant 0 : index
    %2 = vector.load %arg2[%c0_1, %c0_2] : memref<128x128xbf16, #tpu.memory_space<vmem>>, vector<128x128xbf16>
    %cst = arith.constant dense<0.000000e+00> : vector<8x128xf32>
    %3 = tpu.matmul %1, %2, %cst {dimension_numbers = #tpu.dot_dimension_numbers<[1], [0], [0], [1], [0, 0, 1, 1], [], []>} : vector<8x128xbf16>, vector<128x128xbf16>, vector<8x128xf32> -> vector<8x128xf32>
    %c0_3 = arith.constant 0 : index
    %c0_4 = arith.constant 0 : index
    %4 = vector.load %arg3[%c0_3, %c0_4] : memref<1x128xf32, #tpu.memory_space<vmem>>, vector<1x128xf32>
    %5 = vector.broadcast %4 : vector<1x128xf32> to vector<8x128xf32>
    %6 = arith.addf %3, %5 : vector<8x128xf32>
    %cst_5 = arith.constant dense<0xFF800000> : vector<8xf32>
    %7 = vector.multi_reduction <maximumf>, %6, %cst_5 [1] : vector<8x128xf32> to vector<8xf32>
    %8 = vector.shape_cast %7 : vector<8xf32> to vector<8x1xf32>
    %9 = vector.broadcast %8 : vector<8x1xf32> to vector<8x128xf32>
    %10 = arith.subf %6, %9 : vector<8x128xf32>
    %11 = math.exp %10 : vector<8x128xf32>
    %cst_6 = arith.constant dense<0.000000e+00> : vector<8xf32>
    %12 = vector.multi_reduction <add>, %11, %cst_6 [1] : vector<8x128xf32> to vector<8xf32>
    %13 = vector.shape_cast %12 : vector<8xf32> to vector<8x1xf32>
    %14 = tpu.reciprocal %13 {approx = true} : vector<8x1xf32> -> vector<8x1xf32>
    %15 = arith.mulf %13, %14 : vector<8x1xf32>
    %cst_7 = arith.constant 2.000000e+00 : f32
    %16 = vector.broadcast %cst_7 : f32 to vector<8x1xf32>
    %17 = arith.subf %16, %15 : vector<8x1xf32>
    %18 = arith.mulf %14, %17 : vector<8x1xf32>
    %19 = vector.broadcast %18 : vector<8x1xf32> to vector<8x128xf32>
    %20 = arith.mulf %11, %19 : vector<8x128xf32>
    %21 = vector.extract_strided_slice %20 {offsets = [0, 0], sizes = [8, 7], strides = [1, 1]} : vector<8x128xf32> to vector<8x7xf32>
    %c0_8 = arith.constant 0 : index
    %c0_9 = arith.constant 0 : index
    %22 = vector.load %arg4[%c0_8, %c0_9] : memref<8x7xf32, #tpu.memory_space<vmem>>, vector<8x7xf32>
    tpu.vector_store %arg4[%c0_8, %c0_9], %21 {strides = array<i32>} : memref<8x7xf32, #tpu.memory_space<vmem>>, vector<8x7xf32>,
    return
  }
  func.func @transform_0(%arg0: i32) -> (i32, i32) {
    %c0_i32 = arith.constant 0 : i32
    %c0_i32_0 = arith.constant 0 : i32
    return %arg0, %c0_i32 : i32, i32
  }
  func.func @transform_1(%arg0: i32) -> (i32, i32) {
    %c0_i32 = arith.constant 0 : i32
    %c0_i32_0 = arith.constant 0 : i32
    %c0_i32_1 = arith.constant 0 : i32
    return %c0_i32, %c0_i32_0 : i32, i32
  }
  func.func @transform_2(%arg0: i32) -> (i32, i32) {
    %c0_i32 = arith.constant 0 : i32
    %c0_i32_0 = arith.constant 0 : i32
    %c0_i32_1 = arith.constant 0 : i32
    return %c0_i32, %c0_i32_0 : i32, i32
  }
  func.func @transform_3(%arg0: i32) -> (i32, i32) {
    %c0_i32 = arith.constant 0 : i32
    %c0_i32_0 = arith.constant 0 : i32
    return %arg0, %c0_i32 : i32, i32
  }
}

</mosaic_0001>

<bundles_post_ra>
// kernel: tpu_custom_call.1
= control target key start
LH: loop header
LB: loop body
LE: loop exit
PB: predicated region body
PF: predicated region fallthrough
CT: control target
= control target key end

     0   :  { %8 = vsyncpa [#allocation3], 0  ;;  %s325_s0 = inlined_call_operand.hbm [shape: f32[8,128], index: 0, kind: input, shape index: {}]   ;;  %s326_s1 = inlined_call_operand.hbm [shape: bf16[128,128], index: 1, kind: input, shape index: {}]   ;;  %s327_s2 = inlined_call_operand.vmem [shape: f32[1,128], index: 2, kind: input, shape index: {}]   ;;  %s328_s3 = inlined_call_operand.hbm [shape: f32[8,7], index: 3, kind: output, shape index: {}]  }
   0x1   :  { %9 = vsyncpa [#allocation6], 0 }
   0x2   :  { %10 = vsyncpa [#allocation4], 0  ;;  %s16_s14 = sshll.u32 %s325_s0, 4  ;;  %s288_s15 = smov [#allocation2]   ;;  %s17_s14 = int_to_ptr.hbm [resolvable:$true] %s16_s14 }
   0x3   :  { %s18_s16 = sshll.u32 %s288_s15, 4  ;;  %s26_s19 = sshll.u32 %s326_s1, 4  ;;  %s19_s16 = int_to_ptr.vmem [resolvable:$true] %s18_s16  ;;  %s27_s19 = int_to_ptr.hbm [resolvable:$true] %s26_s19 }
   0x4   :  { %21 = dma.hbm_to_vmem [thread:$0]  %s17_s14, 128, %s19_s16, [#allocation3]  }
   0x5   :  { %s289_s20 = smov [#allocation5]   ;;  %s290_s22 = smov 64  }
   0x6   :  { %s28_s21 = sshll.u32 %s289_s20, 4  ;;  %s291_s23 = smov 4   ;;  %s29_s21 = int_to_ptr.vmem [resolvable:$true] %s28_s21 }
   0x7   :  { %34 = dma.hbm_to_vmem [thread:$0]  %s27_s19, 1024, %s29_s21, [#allocation6], %s290_s22, %s290_s22, %s291_s23  }
   0x8   :  { %282 = dma.done.wait [#allocation3], 128  }
   0x9   :  { %283 = vsyncadd [#allocation3], 4294967168 }
   0xa   :  { %284 = dma.done.wait [#allocation6], 1024  }
   0xb   :  { %285 = vsyncadd [#allocation6], 4294966272  ;;  %v199_v0 = vld [vmem:[#allocation5 + $0x38] sm:$0xff]  ;;  %v198_v1 = vld [vmem:[#allocation5 + $0x30] sm:$0xff]  ;;  %s292_s24 = smov [#allocation7]   ;;  %vm140_vm0 = vcmask 56320  }
   0xc   :  { %115 = vmatpush.bf16.msra.mxu0 %v199_v0  ;;  %v197_v2 = vld [vmem:[#allocation5 + $0x28] sm:$0xff]  ;;  %v196_v3 = vld [vmem:[#allocation5 + $0x20] sm:$0xff]  ;;  %v195_v4 = vld [vmem:[#allocation5 + $0x18] sm:$0xff]  ;;  %s147_s25 = sshll.u32 %s292_s24, 4  ;;  %s148_s25 = int_to_ptr.vmem [resolvable:$true] %s147_s25 }
   0xd   :  { %v194_v5 = vld [vmem:[#allocation5 + $0x10] sm:$0xff]  ;;  %v193_v6 = vld [vmem:[#allocation5 + $0x8] sm:$0xff]  ;;  %v192_v7 = vld [vmem:[#allocation5] sm:$0xff] }
   0xe   :  { %v45_v8 = vld [vmem:[#allocation2] sm:$0xff] }
   0xf   :  { %v46_v9 = vpack.c.bf16 %v45_v8, %v45_v8  ;;  %v205_v10 = vld [vmem:[%s327_s2] ss:$0 sm:$0xff]  ;;  %s149_s2 = sshll.u32 %s328_s3, 4  ;;  %s150_s2 = int_to_ptr.hbm [resolvable:$true] %s149_s2 }
  0x10   :  { %116 = vmatpush.bf16.msra.mxu0 %v198_v1 }
  0x14   :  { %117 = vmatpush.bf16.msra.mxu0 %v197_v2 }
  0x18   :  { %118 = vmatpush.bf16.msra.mxu0 %v196_v3 }
  0x1c   :  { %119 = vmatpush.bf16.msra.mxu0 %v195_v4 }
  0x20   :  { %120 = vmatpush.bf16.msra.mxu0 %v194_v5 }
  0x24   :  { %121 = vmatpush.bf16.msra.mxu0 %v193_v6 }
  0x28   :  { %122 = vmatpush.bf16.msra.mxu0 %v192_v7 }
  0x2b   :  { %123 = vmatmul.bf16.vlgmr.msra.gmra.mxu0 %v46_v9 }
  0xa8   :  { %v124_v11 = vpop.f32.mrf.mxu0 }
  0xa9   :  { %v125_v12 = vadd.f32 %v205_v10, %v124_v11 }
  0xab   :  { %128 = vmax.xlane.f32.xlu0 %v125_v12 }
  0xb0   :  { %v126_v13 = vpop.f32.mrf.mxu0 }
 0x11e   :  { %v129_v14 = vpop.xlane.xlu0 %128 }
 0x11f   :  { %v130_v15 = vsub.f32 %v125_v12, %v129_v14 }
 0x121   :  { %v131_v16 = vmul.f32 1.442695, %v130_v15 }
 0x123   :  { %206 = vpow2.f32 %v131_v16 }
 0x129   :  { %v207_v17 = vpop.eup %206 }
 0x12a   :  { %133 = vadd.xlane.f32.xlu0 %v207_v17 }
 0x19d   :  { %v134_v18 = vpop.xlane.xlu0 %133 }
 0x19e   :  { %208 = vrcp.f32 %v134_v18 }
 0x1a4   :  { %v209_v19 = vpop.eup %208 }
 0x1a5   :  { %v136_v20 = vmul.f32 %v209_v19, %v134_v18 }
 0x1a7   :  { %v137_v21 = vsub.f32 2.0, %v136_v20 }
 0x1a9   :  { %v138_v22 = vmul.f32 %v209_v19, %v137_v21 }
 0x1ab   :  { %v139_v23 = vmul.f32 %v207_v17, %v138_v22 }
 0x1ad   :  { %141 = vst.msk [vmem:[#allocation7] sm:$0xff] %vm140_vm0, %v139_v23 }
 0x1ae   :  { %152 = dma.vmem_to_hbm [thread:$0]  %s148_s25, 128, %s150_s2, [#allocation4]  }
 0x1af   :  { %286 = dma.done.wait [#allocation4], 128  }
 0x1b0   :  { %287 = vsyncadd [#allocation4], 4294967168 }
 0x1b1   :  { %157 = vsyncpa [#allocation3], 1 }
 0x1b2   :  { %158 = vsyncpa [#allocation6], 1 }
 0x1b3   :  { %159 = vsyncpa [#allocation4], 1 }

// kernel: tpu_custom_call.1
= control target key start
LH: loop header
LB: loop body
LE: loop exit
PB: predicated region body
PF: predicated region fallthrough
CT: control target
= control target key end

     0   :  { %8 = vsyncpa [#allocation3], 0  ;;  %s325_s0 = inlined_call_operand.hbm [shape: f32[8,128], index: 0, kind: input, shape index: {}]   ;;  %s326_s1 = inlined_call_operand.hbm [shape: bf16[128,128], index: 1, kind: input, shape index: {}]   ;;  %s327_s2 = inlined_call_operand.vmem [shape: f32[1,128], index: 2, kind: input, shape index: {}]   ;;  %s328_s3 = inlined_call_operand.hbm [shape: f32[8,7], index: 3, kind: output, shape index: {}]  }
   0x1   :  { %9 = vsyncpa [#allocation6], 0 }
   0x2   :  { %10 = vsyncpa [#allocation4], 0  ;;  %s16_s14 = sshll.u32 %s325_s0, 4  ;;  %s288_s15 = smov [#allocation2]   ;;  %s17_s14 = int_to_ptr.hbm [resolvable:$true] %s16_s14 }
   0x3   :  { %s18_s16 = sshll.u32 %s288_s15, 4  ;;  %s26_s19 = sshll.u32 %s326_s1, 4  ;;  %s19_s16 = int_to_ptr.vmem [resolvable:$true] %s18_s16  ;;  %s27_s19 = int_to_ptr.hbm [resolvable:$true] %s26_s19 }
   0x4   :  { %21 = dma.hbm_to_vmem [thread:$0]  %s17_s14, 128, %s19_s16, [#allocation3]  }
   0x5   :  { %s289_s20 = smov [#allocation5]   ;;  %s290_s22 = smov 64  }
   0x6   :  { %s28_s21 = sshll.u32 %s289_s20, 4  ;;  %s291_s23 = smov 4   ;;  %s29_s21 = int_to_ptr.vmem [resolvable:$true] %s28_s21 }
   0x7   :  { %34 = dma.hbm_to_vmem [thread:$0]  %s27_s19, 1024, %s29_s21, [#allocation6], %s290_s22, %s290_s22, %s291_s23  }
   0x8   :  { %282 = dma.done.wait [#allocation3], 128  }
   0x9   :  { %283 = vsyncadd [#allocation3], 4294967168 }
   0xa   :  { %284 = dma.done.wait [#allocation6], 1024  }
   0xb   :  { %285 = vsyncadd [#allocation6], 4294966272  ;;  %v199_v0 = vld [vmem:[#allocation5 + $0x38] sm:$0xff]  ;;  %v198_v1 = vld [vmem:[#allocation5 + $0x30] sm:$0xff]  ;;  %s292_s24 = smov [#allocation7]   ;;  %vm140_vm0 = vcmask 56320  }
   0xc   :  { %115 = vmatpush.bf16.msra.mxu0 %v199_v0  ;;  %v197_v2 = vld [vmem:[#allocation5 + $0x28] sm:$0xff]  ;;  %v196_v3 = vld [vmem:[#allocation5 + $0x20] sm:$0xff]  ;;  %v195_v4 = vld [vmem:[#allocation5 + $0x18] sm:$0xff]  ;;  %s147_s25 = sshll.u32 %s292_s24, 4  ;;  %s148_s25 = int_to_ptr.vmem [resolvable:$true] %s147_s25 }
   0xd   :  { %v194_v5 = vld [vmem:[#allocation5 + $0x10] sm:$0xff]  ;;  %v193_v6 = vld [vmem:[#allocation5 + $0x8] sm:$0xff]  ;;  %v192_v7 = vld [vmem:[#allocation5] sm:$0xff] }
   0xe   :  { %v45_v8 = vld [vmem:[#allocation2] sm:$0xff] }
   0xf   :  { %v46_v9 = vpack.c.bf16 %v45_v8, %v45_v8  ;;  %v205_v10 = vld [vmem:[%s327_s2] ss:$0 sm:$0xff]  ;;  %s149_s2 = sshll.u32 %s328_s3, 4  ;;  %s150_s2 = int_to_ptr.hbm [resolvable:$true] %s149_s2 }
  0x10   :  { %116 = vmatpush.bf16.msra.mxu0 %v198_v1 }
  0x14   :  { %117 = vmatpush.bf16.msra.mxu0 %v197_v2 }
  0x18   :  { %118 = vmatpush.bf16.msra.mxu0 %v196_v3 }
  0x1c   :  { %119 = vmatpush.bf16.msra.mxu0 %v195_v4 }
  0x20   :  { %120 = vmatpush.bf16.msra.mxu0 %v194_v5 }
  0x24   :  { %121 = vmatpush.bf16.msra.mxu0 %v193_v6 }
  0x28   :  { %122 = vmatpush.bf16.msra.mxu0 %v192_v7 }
  0x2b   :  { %123 = vmatmul.bf16.vlgmr.msra.gmra.mxu0 %v46_v9 }
  0xa8   :  { %v124_v11 = vpop.f32.mrf.mxu0 }
  0xa9   :  { %v125_v12 = vadd.f32 %v205_v10, %v124_v11 }
  0xab   :  { %128 = vmax.xlane.f32.xlu0 %v125_v12 }
  0xb0   :  { %v126_v13 = vpop.f32.mrf.mxu0 }
 0x11e   :  { %v129_v14 = vpop.xlane.xlu0 %128 }
 0x11f   :  { %v130_v15 = vsub.f32 %v125_v12, %v129_v14 }
 0x121   :  { %v131_v16 = vmul.f32 1.442695, %v130_v15 }
 0x123   :  { %206 = vpow2.f32 %v131_v16 }
 0x129   :  { %v207_v17 = vpop.eup %206 }
 0x12a   :  { %133 = vadd.xlane.f32.xlu0 %v207_v17 }
 0x19d   :  { %v134_v18 = vpop.xlane.xlu0 %133 }
 0x19e   :  { %208 = vrcp.f32 %v134_v18 }
 0x1a4   :  { %v209_v19 = vpop.eup %208 }
 0x1a5   :  { %v136_v20 = vmul.f32 %v209_v19, %v134_v18 }
 0x1a7   :  { %v137_v21 = vsub.f32 2.0, %v136_v20 }
 0x1a9   :  { %v138_v22 = vmul.f32 %v209_v19, %v137_v21 }
 0x1ab   :  { %v139_v23 = vmul.f32 %v207_v17, %v138_v22 }
 0x1ad   :  { %141 = vst.msk [vmem:[#allocation7] sm:$0xff] %vm140_vm0, %v139_v23 }
 0x1ae   :  { %152 = dma.vmem_to_hbm [thread:$0]  %s148_s25, 128, %s150_s2, [#allocation4]  }
 0x1af   :  { %286 = dma.done.wait [#allocation4], 128  }
 0x1b0   :  { %287 = vsyncadd [#allocation4], 4294967168 }
 0x1b1   :  { %157 = vsyncpa [#allocation3], 1 }
 0x1b2   :  { %158 = vsyncpa [#allocation6], 1 }
 0x1b3   :  { %159 = vsyncpa [#allocation4], 1 }

</bundles_post_ra>
